<compile_context>
chip_gen: v7x
topology: tpu7x:2x2x1
jax: 0.10.0
libtpu: 0.0.40
codegen_flags: <defaults>
</compile_context>

<pallas_src>
import functools

import jax
import jax.numpy as jnp
from jax import lax
from jax.experimental import pallas as pl
from jax.experimental.pallas import tpu as pltpu

_LANE = 128
_ACC_ROWS = 8                          # single f32 vreg accumulator (8, 128)
_CHUNK = _ACC_ROWS * _LANE             # kernel prefix granularity (1024 elems)
_MAX_BLOCK_ROWS = 8192                 # (8192, 128) f32 = 4 MiB per input/buffer
_VMEM_LIMIT_BYTES = 32 * 1024 * 1024   # > v5e's 16 MiB scoped default; still
                                       # well under v7x's 64 MiB physical VMEM


def _bce_logits_loss(x, t):
    """Fused clamped BCE-with-logits == sigmoid + BCELoss (-100 log clamp).

    loss = min(max(x,0),100) - t*clip(x,-100,100) + log(1+exp(-|x|))
    equals t*min(softplus(-x),100) + (1-t)*min(softplus(x),100) to within
    exp(-100) (f32 zero), i.e. PyTorch BCELoss's log clamp is preserved.
    """
    x = x.astype(jnp.float32)
    t = t.astype(jnp.float32)
    return (jnp.minimum(jnp.maximum(x, 0.0), 100.0)
            - t * jnp.clip(x, -100.0, 100.0)
            + jnp.log(1.0 + jnp.exp(-jnp.abs(x))))


def _bce_sum_kernel(x_ref, t_ref, out_ref, *, block_rows, blocks_per_split,
                    full_blocks, tail_rows, needs_gating):
    c = pl.program_id(0)               # core split ("parallel", v7x megacore)
    i = pl.program_id(1)               # block within the split ("arbitrary")
    b = c * blocks_per_split + i       # logical block id over the row slab

    @pl.when(i == 0)
    def _():
        out_ref[...] = jnp.zeros_like(out_ref)

    loss = _bce_logits_loss(x_ref[...], t_ref[...])

    def _accumulate(vals):
        # Fold the whole block into a single-vreg accumulator: same number of
        # VALU adds as a full-block accumulator, but only ~4 KiB of
        # accumulator VMEM traffic per step.
        out_ref[...] += vals.reshape(-1, _ACC_ROWS, _LANE).sum(
            axis=0, keepdims=True)

    if not needs_gating:
        # Every block is fully valid: single unmasked accumulate path.
        _accumulate(loss)
    else:
        @pl.when(b < full_blocks)
        def _():                       # fully valid block: no mask math
            _accumulate(loss)

        if tail_rows > 0:
            @pl.when(b == full_blocks)
            def _():                   # the single partial block: masked path
                row = lax.broadcasted_iota(jnp.int32, (block_rows, _LANE), 0)
                # Select (not multiply) so NaN/Inf in the unspecified OOB rows
                # of the partial block cannot propagate.
                _accumulate(jnp.where(row < tail_rows, loss, 0.0))
        # Phantom blocks (b beyond the last real block, arising from the
        # 2-way split of an odd block count) accumulate nothing.


def multi_label_loss(predictions, target):
    """Scalar mean BCE(sigmoid(predictions), target), computed in Pallas."""
    x = predictions.reshape(-1)
    t = target.reshape(-1)
    n = x.shape[0]

    # Kernel covers the largest prefix that is a whole number of (8, 128)
    # tiles; the (<1024-element) remainder is folded in with plain jnp so we
    # never materialize padded full-size copies of the (HBM-bound) inputs.
    n_main = (n // _CHUNK) * _CHUNK
    loss_sum = jnp.float32(0.0)
    if n_main < n:
        loss_sum = loss_sum + jnp.sum(_bce_logits_loss(x[n_main:], t[n_main:]))

    if n_main > 0:
        rows = n_main // _LANE                   # multiple of _ACC_ROWS
        x2 = x[:n_main].reshape(rows, _LANE)     # native dtype; cast in-kernel
        t2 = t[:n_main].reshape(rows, _LANE)

        block_rows = rows if rows <= _MAX_BLOCK_ROWS else _MAX_BLOCK_ROWS
        total_blocks = (rows + block_rows - 1) // block_rows
        tail_rows = rows % block_rows            # 0 => last block is full
        full_blocks = total_blocks - (1 if tail_rows else 0)

        # Split the block range across TensorCores (2 on v7x; a harmless
        # sequential outer loop of size 2 on v5e/v6e single-TC chips).
        num_splits = 2 if total_blocks >= 2 else 1
        blocks_per_split = (total_blocks + num_splits - 1) // num_splits
        has_phantom = num_splits * blocks_per_split > total_blocks
        needs_gating = (tail_rows > 0) or has_phantom

        if has_phantom:
            # Clamp phantom block indices so their (discarded) DMA stays in
            # bounds; the kernel skips their accumulation via the logical `b`.
            in_idx = lambda c, i: (jnp.minimum(c * blocks_per_split + i,
                                               total_blocks - 1), 0)
        else:
            in_idx = lambda c, i: (c * blocks_per_split + i, 0)
        in_spec = pl.BlockSpec((block_rows, _LANE), in_idx)
        out_spec = pl.BlockSpec((1, _ACC_ROWS, _LANE), lambda c, i: (c, 0, 0))

        kernel = functools.partial(
            _bce_sum_kernel,
            block_rows=block_rows,
            blocks_per_split=blocks_per_split,
            full_blocks=full_blocks,
            tail_rows=tail_rows,
            needs_gating=needs_gating,
        )

        partials = pl.pallas_call(
            kernel,
            out_shape=jax.ShapeDtypeStruct(
                (num_splits, _ACC_ROWS, _LANE), jnp.float32),
            grid_spec=pltpu.PrefetchScalarGridSpec(
                num_scalar_prefetch=0,
                grid=(num_splits, blocks_per_split),
                in_specs=[in_spec, in_spec],
                out_specs=out_spec,
            ),
            compiler_params=pltpu.CompilerParams(
                dimension_semantics=("parallel", "arbitrary"),
                vmem_limit_bytes=_VMEM_LIMIT_BYTES,
            ),
        )(x2, t2)
        loss_sum = loss_sum + jnp.sum(partials)

    return loss_sum / jnp.float32(n)


def _reference(predictions, target):
    # Exact PyTorch BCELoss semantics: sigmoid, then logs clamped at -100.
    p = jax.nn.sigmoid(predictions.astype(jnp.float32))
    t = target.astype(jnp.float32)
    loss = -(t * jnp.maximum(jnp.log(p), -100.0)
             + (1.0 - t) * jnp.maximum(jnp.log(1.0 - p), -100.0))
    return jnp.mean(loss)


if __name__ == "__main__":
    key = jax.random.PRNGKey(0)
    k1, k2 = jax.random.split(key)
    # predictions: logits; target: multi-label {0,1} ground truth, NCHW-shaped.
    predictions = jax.random.normal(k1, (2, 4, 16, 16), dtype=jnp.float32)
    target = jax.random.bernoulli(k2, 0.3, (2, 4, 16, 16)).astype(jnp.float32)

    loss = jax.block_until_ready(multi_label_loss(predictions, target))
    ref = jax.block_until_ready(_reference(predictions, target))
    assert jnp.allclose(loss, ref, atol=1e-5, rtol=1e-5), (loss, ref)
    print("KERNEL_OK")
</pallas_src>

<mosaic_0001>
module attributes {stable_mosaic.version = 11 : i64} {
  func.func @_bce_sum_kernel(%arg0: i32, %arg1: i32, %arg2: memref<16x128xf32, #tpu.memory_space<vmem>>, %arg3: memref<16x128xf32, #tpu.memory_space<vmem>>, %arg4: memref<1x8x128xf32, #tpu.memory_space<vmem>>) attributes {dimension_semantics = [#tpu.dimension_semantics<parallel>, #tpu.dimension_semantics<arbitrary>], iteration_bounds = array<i64: 1, 1>, scalar_prefetch = 0 : i64, scratch_operands = 0 : i64, tpu.core_type = #tpu.core_type<tc>, window_params = [{transform_indices = @transform_0, window_bounds = array<i64: 16, 128>}, {transform_indices = @transform_1, window_bounds = array<i64: 16, 128>}, {transform_indices = @transform_2, window_bounds = array<i64: 1, 8, 128>}]} {
    %c0_i32 = arith.constant 0 : i32
    %0 = arith.cmpi eq, %arg1, %c0_i32 : i32
    %1 = arith.extui %0 : i1 to i32
    %c0_i32_0 = arith.constant 0 : i32
    %2 = arith.cmpi ne, %1, %c0_i32_0 : i32
    scf.if %2 {
      %cst_16 = arith.constant 0.000000e+00 : f32
      %29 = vector.broadcast %cst_16 : f32 to vector<1x8x128xf32>
      %c0_17 = arith.constant 0 : index
      %c0_18 = arith.constant 0 : index
      %c0_19 = arith.constant 0 : index
      %30 = vector.load %arg4[%c0_17, %c0_18, %c0_19] : memref<1x8x128xf32, #tpu.memory_space<vmem>>, vector<1x8x128xf32>
      tpu.vector_store %arg4[%c0_17, %c0_18, %c0_19], %29 {strides = array<i32>} : memref<1x8x128xf32, #tpu.memory_space<vmem>>, vector<1x8x128xf32>,
    } else {
    }
    %c0 = arith.constant 0 : index
    %c0_1 = arith.constant 0 : index
    %3 = vector.load %arg2[%c0, %c0_1] : memref<16x128xf32, #tpu.memory_space<vmem>>, vector<16x128xf32>
    %c0_2 = arith.constant 0 : index
    %c0_3 = arith.constant 0 : index
    %4 = vector.load %arg3[%c0_2, %c0_3] : memref<16x128xf32, #tpu.memory_space<vmem>>, vector<16x128xf32>
    %cst = arith.constant 0.000000e+00 : f32
    %5 = vector.broadcast %cst : f32 to vector<16x128xf32>
    %6 = arith.maximumf %3, %5 : vector<16x128xf32>
    %cst_4 = arith.constant 1.000000e+02 : f32
    %7 = vector.broadcast %cst_4 : f32 to vector<16x128xf32>
    %8 = arith.minimumf %6, %7 : vector<16x128xf32>
    %cst_5 = arith.constant -1.000000e+02 : f32
    %cst_6 = arith.constant 1.000000e+02 : f32
    %9 = vector.broadcast %cst_5 : f32 to vector<16x128xf32>
    %10 = arith.maximumf %9, %3 : vector<16x128xf32>
    %11 = vector.broadcast %cst_6 : f32 to vector<16x128xf32>
    %12 = arith.minimumf %11, %10 : vector<16x128xf32>
    %13 = arith.mulf %4, %12 : vector<16x128xf32>
    %14 = arith.subf %8, %13 : vector<16x128xf32>
    %15 = math.absf %3 : vector<16x128xf32>
    %cst_7 = arith.constant 0.000000e+00 : f32
    %16 = vector.broadcast %cst_7 : f32 to vector<16x128xf32>
    %17 = arith.subf %16, %15 : vector<16x128xf32>
    %18 = math.exp %17 : vector<16x128xf32>
    %cst_8 = arith.constant 1.000000e+00 : f32
    %19 = vector.broadcast %cst_8 : f32 to vector<16x128xf32>
    %20 = arith.addf %19, %18 : vector<16x128xf32>
    %21 = math.log %20 : vector<16x128xf32>
    %22 = arith.addf %14, %21 : vector<16x128xf32>
    %c0_9 = arith.constant 0 : index
    %c0_10 = arith.constant 0 : index
    %c0_11 = arith.constant 0 : index
    %23 = vector.load %arg4[%c0_9, %c0_10, %c0_11] : memref<1x8x128xf32, #tpu.memory_space<vmem>>, vector<1x8x128xf32>
    %24 = vector.shape_cast %22 : vector<16x128xf32> to vector<2x8x128xf32>
    %cst_12 = arith.constant dense<0.000000e+00> : vector<8x128xf32>
    %25 = vector.multi_reduction <add>, %24, %cst_12 [0] : vector<2x8x128xf32> to vector<8x128xf32>
    %26 = vector.shape_cast %25 : vector<8x128xf32> to vector<1x8x128xf32>
    %27 = arith.addf %23, %26 : vector<1x8x128xf32>
    %c0_13 = arith.constant 0 : index
    %c0_14 = arith.constant 0 : index
    %c0_15 = arith.constant 0 : index
    %28 = vector.load %arg4[%c0_13, %c0_14, %c0_15] : memref<1x8x128xf32, #tpu.memory_space<vmem>>, vector<1x8x128xf32>
    tpu.vector_store %arg4[%c0_13, %c0_14, %c0_15], %27 {strides = array<i32>} : memref<1x8x128xf32, #tpu.memory_space<vmem>>, vector<1x8x128xf32>,
    return
  }
  func.func @transform_0(%arg0: i32, %arg1: i32) -> (i32, i32) {
    %c1_i32 = arith.constant 1 : i32
    %0 = arith.muli %arg0, %c1_i32 : i32
    %1 = arith.addi %0, %arg1 : i32
    %c0_i32 = arith.constant 0 : i32
    %c0_i32_0 = arith.constant 0 : i32
    return %1, %c0_i32 : i32, i32
  }
  func.func @transform_1(%arg0: i32, %arg1: i32) -> (i32, i32) {
    %c1_i32 = arith.constant 1 : i32
    %0 = arith.muli %arg0, %c1_i32 : i32
    %1 = arith.addi %0, %arg1 : i32
    %c0_i32 = arith.constant 0 : i32
    %c0_i32_0 = arith.constant 0 : i32
    return %1, %c0_i32 : i32, i32
  }
  func.func @transform_2(%arg0: i32, %arg1: i32) -> (i32, i32, i32) {
    %c0_i32 = arith.constant 0 : i32
    %c0_i32_0 = arith.constant 0 : i32
    %c0_i32_1 = arith.constant 0 : i32
    return %arg0, %c0_i32, %c0_i32_0 : i32, i32, i32
  }
}

</mosaic_0001>

<bundles_post_ra>
// kernel: tpu_custom_call.1
= control target key start
LH: loop header
LB: loop body
LE: loop exit
PB: predicated region body
PF: predicated region fallthrough
CT: control target
= control target key end

     0   :  { %7 = vsyncpa [#allocation3], 0  ;;  %s253_s0 = inlined_call_operand.hbm [shape: f32[16,128], index: 0, kind: input, shape index: {}]   ;;  %s254_s1 = inlined_call_operand.hbm [shape: f32[16,128], index: 1, kind: input, shape index: {}]   ;;  %s255_s2 = inlined_call_operand.hbm [shape: f32[1,8,128], index: 2, kind: output, shape index: {}]  }
   0x1   :  { %8 = vsyncpa [#allocation6], 0 }
   0x2   :  { %9 = vsyncpa [#allocation4], 0  ;;  %s197_s9 = smov [#allocation2]   ;;  %s125_s13 = scalar_lea.hbm %s253_s0, 256 }
   0x3   :  { %s19_s10 = sshll.u32 %s197_s9, 4  ;;  %p126_p0 = scmp.ne.s32.totalorder %s253_s0, %s125_s13  ;;  %s20_s10 = int_to_ptr.vmem [resolvable:$true] %s19_s10 }
   0x4   :  { %p129_p1 = scmp.lt.u32.totalorder %s125_s13, %s253_s0 }
   0x6   :  { %p131_p2 = pnand %p129_p1, %p126_p0 }
   0x8   :  { %134 = shalt.err (!%p131_p2)
}
   0x9   :  { %s135_s18 = scalar_lea.vmem %s20_s10, 256  ;;  %p140_p4 = scmp.lt.s32.totalorder %s20_s10, %s20_s10 }
   0xa   :  { %p136_p3 = scmp.ne.s32.totalorder %s20_s10, %s135_s18  ;;  %p141_p5 = scmp.lt.s32.totalorder %s135_s18, %s135_s18 }
   0xc   :  { %p142_p6 = por %p141_p5, %p140_p4 }
   0xe   :  { %p143_p7 = pnand %p142_p6, %p136_p3 }
  0x10   :  { %146 = shalt.err (!%p143_p7)
}
  0x11   :  { %s198_s19 = smov 128   ;;  %s199_s20 = smov 8  }
  0x12   :  { %25 = dma.hbm_to_vmem [thread:$0]  %s253_s0, 256, %s20_s10, [#allocation3], %s198_s19, %s198_s19, %s199_s20  }
  0x13   :  { %s200_s23 = smov [#allocation5]   ;;  %s147_s27 = scalar_lea.hbm %s254_s1, 256 }
  0x14   :  { %s35_s24 = sshll.u32 %s200_s23, 4  ;;  %p148_p8 = scmp.ne.s32.totalorder %s254_s1, %s147_s27  ;;  %s36_s24 = int_to_ptr.vmem [resolvable:$true] %s35_s24 }
  0x15   :  { %p151_p9 = scmp.lt.u32.totalorder %s147_s27, %s254_s1 }
  0x17   :  { %p153_p10 = pnand %p151_p9, %p148_p8 }
  0x19   :  { %156 = shalt.err (!%p153_p10)
}
  0x1a   :  { %s157_s4 = scalar_lea.vmem %s36_s24, 256  ;;  %p162_p12 = scmp.lt.s32.totalorder %s36_s24, %s36_s24 }
  0x1b   :  { %p158_p11 = scmp.ne.s32.totalorder %s36_s24, %s157_s4  ;;  %p163_p13 = scmp.lt.s32.totalorder %s157_s4, %s157_s4 }
  0x1d   :  { %p164_p0 = por %p163_p13, %p162_p12 }
  0x1f   :  { %p165_p1 = pnand %p164_p0, %p158_p11 }
  0x21   :  { %168 = shalt.err (!%p165_p1)
}
  0x22   :  { %41 = dma.hbm_to_vmem [thread:$0]  %s254_s1, 256, %s36_s24, [#allocation6], %s198_s19, %s198_s19, %s199_s20  }
  0x23   :  { %191 = dma.done.wait [#allocation3], 256  }
  0x24   :  { %192 = vsyncadd [#allocation3], 4294967040 }
  0x25   :  { %193 = dma.done.wait [#allocation6], 256  }
  0x26   :  { %194 = vsyncadd [#allocation6], 4294967040  ;;  %v57_v0 = vld [vmem:[#allocation2] sm:$0xff]  ;;  %v58_v1 = vld [vmem:[#allocation2 + $0x8] sm:$0xff]  ;;  %s201_s1 = smov [#allocation7]  }
  0x27   :  { %v73_v2 = vand.u32 2147483647, %v57_v0  ;;  %v74_v3 = vand.u32 2147483647, %v58_v1  ;;  %v61_v12 = vmax.f32 %v57_v0, 0.0  ;;  %v109_v13 = vclamps-f32 %v57_v0, 100.0 }
  0x28   :  { %v59_v14 = vld [vmem:[#allocation5] sm:$0xff]  ;;  %v62_v15 = vmax.f32 %v58_v1, 0.0  ;;  %v110_v16 = vclamps-f32 %v58_v1, 100.0  ;;  %v60_v17 = vld [vmem:[#allocation5 + $0x8] sm:$0xff]  ;;  %s99_s6 = sshll.u32 %s201_s1, 4  ;;  %s100_s6 = int_to_ptr.vmem [resolvable:$true] %s99_s6 }
  0x29   :  { %v75_v4 = vsub.f32 0.0, %v73_v2  ;;  %v76_v5 = vsub.f32 0.0, %v74_v3  ;;  %v63_v18 = vmin.f32 %v61_v12, 100.0  ;;  %v69_v19 = vmul.f32 %v109_v13, %v59_v14  ;;  %s169_s7 = scalar_lea.vmem %s100_s6, 128  ;;  %p174_p3 = scmp.lt.s32.totalorder %s100_s6, %s100_s6 }
  0x2a   :  { %v64_v20 = vmin.f32 %v62_v15, 100.0  ;;  %v70_v21 = vmul.f32 %v110_v16, %v60_v17  ;;  %p170_p2 = scmp.ne.s32.totalorder %s100_s6, %s169_s7  ;;  %p175_p4 = scmp.lt.s32.totalorder %s169_s7, %s169_s7 }
  0x2b   :  { %v77_v6 = vmul.f32 1.442695, %v75_v4  ;;  %v79_v7 = vmul.f32 1.442695, %v76_v5  ;;  %v71_v22 = vsub.f32 %v63_v18, %v69_v19 }
  0x2c   :  { %v72_v24 = vsub.f32 %v64_v20, %v70_v21  ;;  %p176_p5 = por %p175_p4, %p174_p3 }
  0x2d   :  { %117 = vpow2.f32 %v77_v6 }
  0x2e   :  { %119 = vpow2.f32 %v79_v7  ;;  %p177_p6 = pnand %p176_p5, %p170_p2 }
  0x37   :  { %v118_v8 = vpop.eup %117 }
  0x38   :  { %v120_v9 = vpop.eup %119  ;;  %v81_v10 = vadd.f32 1.0, %v118_v8 }
  0x39   :  { %v82_v11 = vadd.f32 1.0, %v120_v9 }
  0x3a   :  { %121 = vlog2.f32 %v81_v10 }
  0x3b   :  { %123 = vlog2.f32 %v82_v11 }
  0x44   :  { %v122_v23 = vpop.eup %121 }
  0x45   :  { %v124_v25 = vpop.eup %123  ;;  %v84_v26 = vmul.f32 0.6931472, %v122_v23 }
  0x46   :  { %v86_v27 = vmul.f32 0.6931472, %v124_v25 }
  0x47   :  { %v87_v28 = vadd.f32 %v84_v26, %v71_v22 }
  0x48   :  { %v88_v29 = vadd.f32 %v86_v27, %v72_v24 }
  0x4a   :  { %v90_v30 = vadd.f32 %v88_v29, %v87_v28 }
  0x4c   :  { %92 = vst [vmem:[#allocation7] sm:$0xff] %v90_v30 }
  0x4d   :  { %180 = shalt.err (!%p177_p6)
}
  0x4e   :  { %s181_s10 = scalar_lea.hbm %s255_s2, 128 }
  0x4f   :  { %p182_p7 = scmp.ne.s32.totalorder %s255_s2, %s181_s10  ;;  %p185_p8 = scmp.lt.u32.totalorder %s181_s10, %s255_s2 }
  0x51   :  { %p187_p9 = pnand %p185_p8, %p182_p7 }
  0x53   :  { %190 = shalt.err (!%p187_p9)
}
  0x54   :  { %102 = dma.vmem_to_hbm [thread:$0]  %s100_s6, 128, %s255_s2, [#allocation4]  }
  0x55   :  { %195 = dma.done.wait [#allocation4], 128  }
  0x56   :  { %196 = vsyncadd [#allocation4], 4294967168 }
  0x57   :  { %106 = vsyncpa [#allocation3], 1 }
  0x58   :  { %107 = vsyncpa [#allocation6], 1 }
  0x59   :  { %108 = vsyncpa [#allocation4], 1 }

</bundles_post_ra>
